<compile_context>
chip_gen: v5e
topology: v5e:2x2
jax: 0.10.0
libtpu: 0.0.40
codegen_flags: <defaults>
</compile_context>

<pallas_src>
import functools

import jax
import jax.numpy as jnp
from jax import lax
from jax.experimental import pallas as pl
from jax.experimental.pallas import tpu as pltpu


def _apply_activation(y, act_func_type):
    if act_func_type == 'LeackyReLU':
        # nn.LeakyReLU default negative_slope = 0.01
        return jnp.where(y >= 0, y, 0.01 * y)
    elif act_func_type == 'Mish':
        # mish(y) = y * tanh(softplus(y)), rewritten rationally in t = exp(-|y|)
        # (exact, one EUP transcendental):
        #   y >= 0: tanh(softplus(y)) = (2t + 1)   / (2t^2 + 2t + 1)
        #   y <  0: tanh(softplus(y)) = (t^2 + 2t) / (t^2 + 2t + 2)
        t = jnp.exp(-jnp.abs(y))
        u = t * t + 2.0 * t
        num = jnp.where(y >= 0, 2.0 * t + 1.0, u)
        den = jnp.where(y >= 0, u + t * t + 1.0, u + 2.0)
        # den >= 1: EUP approximate reciprocal is safe as a seed; one Newton
        # step restores f32 accuracy while keeping the divide off the VALU.
        inv = pl.reciprocal(den, approx=True)
        inv = inv * (2.0 - den * inv)
        return y * num * inv
    else:
        raise ValueError(f"unsupported act_func_type: {act_func_type}")


def _hidden_kernel(p_ref, w_ref, o_ref, *, act_func_type, eps):
    # p_ref: (B_tile, K, HW)  patches, K = C_in*r*r, HW = Ho*Wo
    # w_ref: (Cg, K)          conv weight (channel group) as a matrix
    # o_ref: (B_tile, Cg, HW)
    w = w_ref[...]                          # native dtype straight to the MXU
    inv_hw = 1.0 / o_ref.shape[-1]
    for b in range(p_ref.shape[0]):         # static unroll over the batch tile
        # Conv2d(kernel=stride=r) == (Cg, K) @ (K, HW) on the MXU, f32 acc.
        # NOTE: the conv bias is intentionally NOT added here -- InstanceNorm's
        # mean subtraction cancels any per-channel constant exactly.
        y = jnp.dot(w, p_ref[b], preferred_element_type=jnp.float32)   # (Cg, HW)

        # InstanceNorm2d(affine=False): biased variance, eps inside the sqrt.
        # Single-pass stats: sum and sum-of-squares in one traversal.
        mean = jnp.sum(y, axis=-1, keepdims=True) * inv_hw
        ex2 = jnp.sum(y * y, axis=-1, keepdims=True) * inv_hw
        var = jnp.maximum(ex2 - mean * mean, 0.0)    # guard tiny negatives
        yn = (y - mean) * lax.rsqrt(var + eps)

        o_ref[b] = _apply_activation(yn, act_func_type).astype(o_ref.dtype)


def _last_kernel(p_ref, w_ref, b_ref, o_ref):
    # p_ref: (B_tile, K, HW); w_ref: (K, 1); b_ref: (1, 1); o_ref: (B_tile, HW)
    # C_out == 1: a (1,K)@(K,HW) matmul would use 1 MXU row and pad the output
    # to 8 sublanes.  Instead do the K-term reduction on the VPU/XLU and pack
    # the batch tile onto sublanes so the output slab stores densely.
    w = w_ref[...].astype(jnp.float32)[None, :, :]   # (1, K, 1)
    p = p_ref[...].astype(jnp.float32)               # (B_tile, K, HW)
    y = jnp.sum(p * w, axis=1) + b_ref[...]          # (B_tile, HW) + (1,1) bcast
    o_ref[...] = jnp.tanh(y).astype(o_ref.dtype)


def downsample(x, weight, bias, *, downsample_rate,
               activation_hidden='LeackyReLU', is_lastlayer=False, eps=1e-5):
    """Pallas forward pass of the PyTorch DownSample module (NCHW input)."""
    N, C, H, W = x.shape
    r = downsample_rate
    assert H % r == 0 and W % r == 0, "spatial dims must be divisible by downsample_rate"
    Ho, Wo = H // r, W // r
    HW = Ho * Wo
    C_out = weight.shape[0]
    K = C * r * r
    assert weight.shape == (C_out, C, r, r)
    assert bias.shape == (C_out,)

    # im2col for the stride==kernel conv: patches[n, (ci,i,j), (ho,wo)].
    # With allow_input_fusion below, XLA fuses this producer into the Pallas
    # input DMA so it does NOT become a separate HBM round trip.
    patches = (x.reshape(N, C, Ho, r, Wo, r)
                 .transpose(0, 1, 3, 5, 2, 4)
                 .reshape(N, K, HW))

    itemsize = jnp.dtype(x.dtype).itemsize

    # Batch tile: amortize per-grid-step overhead while keeping the
    # double-buffered working set small.
    per_img_bytes = (K + C_out) * HW * itemsize
    b_tile = 1
    for cand in range(1, min(N, 8) + 1):
        if N % cand == 0 and cand * per_img_bytes <= (6 << 20):
            b_tile = cand
    n_btiles = N // b_tile

    # Raise the scoped-VMEM limit only when needed (v5e default is 16 MiB);
    # stay below v7x's 64 MiB physical VMEM.
    step_bytes = b_tile * per_img_bytes + C_out * K * itemsize
    needed = 2 * step_bytes + (2 << 20)
    vmem_limit = None if needed <= (16 << 20) else min(needed, 60 << 20)
    # TODO(synk): for very large Ho*Wo, additionally tile the spatial axis with
    # a two-pass (stats, then normalize) InstanceNorm so blocks fit v7x VMEM.

    if is_lastlayer:
        w_col = weight.reshape(1, K).T                       # (K, 1)
        b_sc = bias.reshape(1, 1).astype(jnp.float32)        # scalar bias
        out = pl.pallas_call(
            _last_kernel,
            out_shape=jax.ShapeDtypeStruct((N, HW), x.dtype),
            grid_spec=pltpu.PrefetchScalarGridSpec(
                num_scalar_prefetch=0,
                grid=(n_btiles,),
                in_specs=[pl.BlockSpec((b_tile, K, HW), lambda b: (b, 0, 0)),
                          pl.BlockSpec((K, 1), lambda b: (0, 0)),
                          pl.BlockSpec((1, 1), lambda b: (0, 0))],
                out_specs=pl.BlockSpec((b_tile, HW), lambda b: (b, 0)),
            ),
            compiler_params=pltpu.CompilerParams(
                dimension_semantics=("parallel",),
                allow_input_fusion=[True, False, False],
                vmem_limit_bytes=vmem_limit),
        )(patches, w_col, b_sc)
        return out.reshape(N, 1, Ho, Wo)

    # Hidden path: no bias input at all (cancelled exactly by InstanceNorm).
    # Channel-group grid axis: InstanceNorm stats are per-channel, so channel
    # splits are exact.  Used to keep both v7x TensorCores busy when the batch
    # axis alone is too short; trivial (1 group) at small C_out.
    n_cg = 2 if (n_btiles == 1 and C_out % 16 == 0) else 1
    cg = C_out // n_cg

    w_mat = weight.reshape(C_out, K)
    kernel = functools.partial(_hidden_kernel,
                               act_func_type=activation_hidden, eps=eps)
    out = pl.pallas_call(
        kernel,
        out_shape=jax.ShapeDtypeStruct((N, C_out, HW), x.dtype),
        grid_spec=pltpu.PrefetchScalarGridSpec(
            num_scalar_prefetch=0,
            grid=(n_btiles, n_cg),
            in_specs=[pl.BlockSpec((b_tile, K, HW), lambda b, g: (b, 0, 0)),
                      pl.BlockSpec((cg, K), lambda b, g: (g, 0))],
            out_specs=pl.BlockSpec((b_tile, cg, HW), lambda b, g: (b, g, 0)),
        ),
        compiler_params=pltpu.CompilerParams(
            dimension_semantics=("parallel", "parallel"),
            allow_input_fusion=[True, False],
            vmem_limit_bytes=vmem_limit),
    )(patches, w_mat)

    # (N, C_out, Ho*Wo) is channel-major -> direct reshape back to NCHW.
    return out.reshape(N, C_out, Ho, Wo)


def _reference(x, weight, bias, *, downsample_rate, activation_hidden,
               is_lastlayer, eps=1e-5):
    """Pure-JAX reference matching the PyTorch DownSample forward."""
    r = downsample_rate
    y = lax.conv_general_dilated(
        x.astype(jnp.float32), weight.astype(jnp.float32),
        window_strides=(r, r), padding='VALID',
        dimension_numbers=('NCHW', 'OIHW', 'NCHW'),
        precision=lax.Precision.HIGHEST)
    y = y + bias.reshape(1, -1, 1, 1).astype(jnp.float32)
    if is_lastlayer:
        return jnp.tanh(y).astype(x.dtype)
    mean = y.mean(axis=(2, 3), keepdims=True)
    var = y.var(axis=(2, 3), keepdims=True)       # biased, like InstanceNorm2d
    yn = (y - mean) / jnp.sqrt(var + eps)
    if activation_hidden == 'LeackyReLU':
        out = jnp.where(yn >= 0, yn, 0.01 * yn)
    else:  # Mish
        sp = jnp.maximum(yn, 0.0) + jnp.log1p(jnp.exp(-jnp.abs(yn)))
        out = yn * jnp.tanh(sp)
    return out.astype(x.dtype)


if __name__ == "__main__":
    key = jax.random.PRNGKey(0)
    k_x, k_w, k_b, k_wl, k_bl = jax.random.split(key, 5)

    N, C, H, W = 2, 4, 16, 16
    r = 2

    x = jax.random.normal(k_x, (N, C, H, W), dtype=jnp.float32)
    # Conv2d(C, C, r, r) params (hidden layers).
    w_hidden = jax.random.normal(k_w, (C, C, r, r), dtype=jnp.float32) * 0.2
    b_hidden = jax.random.normal(k_b, (C,), dtype=jnp.float32) * 0.1
    # Conv2d(C, 1, r, r) params (last layer).
    w_last = jax.random.normal(k_wl, (1, C, r, r), dtype=jnp.float32) * 0.2
    b_last = jax.random.normal(k_bl, (1,), dtype=jnp.float32) * 0.1

    configs = [
        dict(weight=w_hidden, bias=b_hidden, activation_hidden='LeackyReLU',
             is_lastlayer=False, tol=1e-4),
        # Slightly looser tolerance: Mish uses the EUP approximate reciprocal
        # (+ one Newton step) instead of a full-precision divide.
        dict(weight=w_hidden, bias=b_hidden, activation_hidden='Mish',
             is_lastlayer=False, tol=1e-3),
        dict(weight=w_last, bias=b_last, activation_hidden='LeackyReLU',
             is_lastlayer=True, tol=1e-4),
    ]

    ok = True
    for cfg in configs:
        y = downsample(x, cfg['weight'], cfg['bias'], downsample_rate=r,
                       activation_hidden=cfg['activation_hidden'],
                       is_lastlayer=cfg['is_lastlayer'])
        y = jax.block_until_ready(y)
        y_ref = _reference(x, cfg['weight'], cfg['bias'], downsample_rate=r,
                           activation_hidden=cfg['activation_hidden'],
                           is_lastlayer=cfg['is_lastlayer'])
        tol = cfg['tol']
        if y.shape != y_ref.shape or not jnp.allclose(y, y_ref, atol=tol, rtol=tol):
            ok = False
            err = jnp.max(jnp.abs(y.astype(jnp.float32) - y_ref.astype(jnp.float32)))
            print(f"MISMATCH (lastlayer={cfg['is_lastlayer']}, "
                  f"act={cfg['activation_hidden']}): max_abs_err={err}")

    if ok:
        print("KERNEL_OK")
</pallas_src>

<mosaic_0001>
module attributes {stable_mosaic.version = 11 : i64} {
  func.func @_hidden_kernel(%arg0: i32, %arg1: i32, %arg2: memref<2x16x64xf32, #tpu.memory_space<vmem>>, %arg3: memref<4x16xf32, #tpu.memory_space<vmem>>, %arg4: memref<2x4x64xf32, #tpu.memory_space<vmem>>) attributes {dimension_semantics = [#tpu.dimension_semantics<parallel>, #tpu.dimension_semantics<parallel>], iteration_bounds = array<i64: 1, 1>, scalar_prefetch = 0 : i64, scratch_operands = 0 : i64, tpu.core_type = #tpu.core_type<tc>, window_params = [{transform_indices = @transform_0, window_bounds = array<i64: 2, 16, 64>}, {transform_indices = @transform_1, window_bounds = array<i64: 4, 16>}, {transform_indices = @transform_2, window_bounds = array<i64: 2, 4, 64>}]} {
    %c0 = arith.constant 0 : index
    %c0_0 = arith.constant 0 : index
    %0 = vector.load %arg3[%c0, %c0_0] : memref<4x16xf32, #tpu.memory_space<vmem>>, vector<4x16xf32>
    %c0_1 = arith.constant 0 : index
    %c0_2 = arith.constant 0 : index
    %c0_3 = arith.constant 0 : index
    %1 = vector.load %arg2[%c0_1, %c0_2, %c0_3] : memref<2x16x64xf32, #tpu.memory_space<vmem>>, vector<1x16x64xf32>
    %2 = vector.shape_cast %1 : vector<1x16x64xf32> to vector<16x64xf32>
    %cst = arith.constant dense<0.000000e+00> : vector<4x64xf32>
    %3 = tpu.matmul %0, %2, %cst {dimension_numbers = #tpu.dot_dimension_numbers<[1], [0], [0], [1], [0, 0, 1, 1], [], []>} : vector<4x16xf32>, vector<16x64xf32>, vector<4x64xf32> -> vector<4x64xf32>
    %cst_4 = arith.constant dense<0.000000e+00> : vector<4xf32>
    %4 = vector.multi_reduction <add>, %3, %cst_4 [1] : vector<4x64xf32> to vector<4xf32>
    %5 = vector.shape_cast %4 : vector<4xf32> to vector<4x1xf32>
    %cst_5 = arith.constant 1.562500e-02 : f32
    %6 = vector.broadcast %cst_5 : f32 to vector<4x1xf32>
    %7 = arith.mulf %5, %6 : vector<4x1xf32>
    %8 = arith.mulf %3, %3 : vector<4x64xf32>
    %cst_6 = arith.constant dense<0.000000e+00> : vector<4xf32>
    %9 = vector.multi_reduction <add>, %8, %cst_6 [1] : vector<4x64xf32> to vector<4xf32>
    %10 = vector.shape_cast %9 : vector<4xf32> to vector<4x1xf32>
    %cst_7 = arith.constant 1.562500e-02 : f32
    %11 = vector.broadcast %cst_7 : f32 to vector<4x1xf32>
    %12 = arith.mulf %10, %11 : vector<4x1xf32>
    %13 = arith.mulf %7, %7 : vector<4x1xf32>
    %14 = arith.subf %12, %13 : vector<4x1xf32>
    %cst_8 = arith.constant 0.000000e+00 : f32
    %15 = vector.broadcast %cst_8 : f32 to vector<4x1xf32>
    %16 = arith.maximumf %14, %15 : vector<4x1xf32>
    %17 = vector.broadcast %7 : vector<4x1xf32> to vector<4x64xf32>
    %18 = arith.subf %3, %17 : vector<4x64xf32>
    %cst_9 = arith.constant 9.99999974E-6 : f32
    %19 = vector.broadcast %cst_9 : f32 to vector<4x1xf32>
    %20 = arith.addf %16, %19 : vector<4x1xf32>
    %21 = math.rsqrt %20 : vector<4x1xf32>
    %22 = vector.broadcast %21 : vector<4x1xf32> to vector<4x64xf32>
    %23 = arith.mulf %18, %22 : vector<4x64xf32>
    %cst_10 = arith.constant 0.000000e+00 : f32
    %24 = vector.broadcast %cst_10 : f32 to vector<4x64xf32>
    %25 = arith.cmpf oge, %23, %24 : vector<4x64xf32>
    %cst_11 = arith.constant 0.00999999977 : f32
    %26 = vector.broadcast %cst_11 : f32 to vector<4x64xf32>
    %27 = arith.mulf %26, %23 : vector<4x64xf32>
    %28 = arith.select %25, %23, %27 : vector<4x64xi1>, vector<4x64xf32>
    %c0_12 = arith.constant 0 : index
    %c0_13 = arith.constant 0 : index
    %c0_14 = arith.constant 0 : index
    %29 = vector.load %arg4[%c0_12, %c0_13, %c0_14] : memref<2x4x64xf32, #tpu.memory_space<vmem>>, vector<1x4x64xf32>
    %30 = vector.shape_cast %29 : vector<1x4x64xf32> to vector<4x64xf32>
    %31 = vector.shape_cast %28 : vector<4x64xf32> to vector<1x4x64xf32>
    tpu.vector_store %arg4[%c0_12, %c0_13, %c0_14], %31 {strides = array<i32>} : memref<2x4x64xf32, #tpu.memory_space<vmem>>, vector<1x4x64xf32>,
    %c1 = arith.constant 1 : index
    %c0_15 = arith.constant 0 : index
    %c0_16 = arith.constant 0 : index
    %32 = vector.load %arg2[%c1, %c0_15, %c0_16] : memref<2x16x64xf32, #tpu.memory_space<vmem>>, vector<1x16x64xf32>
    %33 = vector.shape_cast %32 : vector<1x16x64xf32> to vector<16x64xf32>
    %cst_17 = arith.constant dense<0.000000e+00> : vector<4x64xf32>
    %34 = tpu.matmul %0, %33, %cst_17 {dimension_numbers = #tpu.dot_dimension_numbers<[1], [0], [0], [1], [0, 0, 1, 1], [], []>} : vector<4x16xf32>, vector<16x64xf32>, vector<4x64xf32> -> vector<4x64xf32>
    %cst_18 = arith.constant dense<0.000000e+00> : vector<4xf32>
    %35 = vector.multi_reduction <add>, %34, %cst_18 [1] : vector<4x64xf32> to vector<4xf32>
    %36 = vector.shape_cast %35 : vector<4xf32> to vector<4x1xf32>
    %cst_19 = arith.constant 1.562500e-02 : f32
    %37 = vector.broadcast %cst_19 : f32 to vector<4x1xf32>
    %38 = arith.mulf %36, %37 : vector<4x1xf32>
    %39 = arith.mulf %34, %34 : vector<4x64xf32>
    %cst_20 = arith.constant dense<0.000000e+00> : vector<4xf32>
    %40 = vector.multi_reduction <add>, %39, %cst_20 [1] : vector<4x64xf32> to vector<4xf32>
    %41 = vector.shape_cast %40 : vector<4xf32> to vector<4x1xf32>
    %cst_21 = arith.constant 1.562500e-02 : f32
    %42 = vector.broadcast %cst_21 : f32 to vector<4x1xf32>
    %43 = arith.mulf %41, %42 : vector<4x1xf32>
    %44 = arith.mulf %38, %38 : vector<4x1xf32>
    %45 = arith.subf %43, %44 : vector<4x1xf32>
    %cst_22 = arith.constant 0.000000e+00 : f32
    %46 = vector.broadcast %cst_22 : f32 to vector<4x1xf32>
    %47 = arith.maximumf %45, %46 : vector<4x1xf32>
    %48 = vector.broadcast %38 : vector<4x1xf32> to vector<4x64xf32>
    %49 = arith.subf %34, %48 : vector<4x64xf32>
    %cst_23 = arith.constant 9.99999974E-6 : f32
    %50 = vector.broadcast %cst_23 : f32 to vector<4x1xf32>
    %51 = arith.addf %47, %50 : vector<4x1xf32>
    %52 = math.rsqrt %51 : vector<4x1xf32>
    %53 = vector.broadcast %52 : vector<4x1xf32> to vector<4x64xf32>
    %54 = arith.mulf %49, %53 : vector<4x64xf32>
    %cst_24 = arith.constant 0.000000e+00 : f32
    %55 = vector.broadcast %cst_24 : f32 to vector<4x64xf32>
    %56 = arith.cmpf oge, %54, %55 : vector<4x64xf32>
    %cst_25 = arith.constant 0.00999999977 : f32
    %57 = vector.broadcast %cst_25 : f32 to vector<4x64xf32>
    %58 = arith.mulf %57, %54 : vector<4x64xf32>
    %59 = arith.select %56, %54, %58 : vector<4x64xi1>, vector<4x64xf32>
    %c1_26 = arith.constant 1 : index
    %c0_27 = arith.constant 0 : index
    %c0_28 = arith.constant 0 : index
    %60 = vector.load %arg4[%c1_26, %c0_27, %c0_28] : memref<2x4x64xf32, #tpu.memory_space<vmem>>, vector<1x4x64xf32>
    %61 = vector.shape_cast %60 : vector<1x4x64xf32> to vector<4x64xf32>
    %62 = vector.shape_cast %59 : vector<4x64xf32> to vector<1x4x64xf32>
    tpu.vector_store %arg4[%c1_26, %c0_27, %c0_28], %62 {strides = array<i32>} : memref<2x4x64xf32, #tpu.memory_space<vmem>>, vector<1x4x64xf32>,
    return
  }
  func.func @transform_0(%arg0: i32, %arg1: i32) -> (i32, i32, i32) {
    %c0_i32 = arith.constant 0 : i32
    %c0_i32_0 = arith.constant 0 : i32
    %c0_i32_1 = arith.constant 0 : i32
    return %arg0, %c0_i32, %c0_i32_0 : i32, i32, i32
  }
  func.func @transform_1(%arg0: i32, %arg1: i32) -> (i32, i32) {
    %c0_i32 = arith.constant 0 : i32
    %c0_i32_0 = arith.constant 0 : i32
    return %arg1, %c0_i32 : i32, i32
  }
  func.func @transform_2(%arg0: i32, %arg1: i32) -> (i32, i32, i32) {
    %c0_i32 = arith.constant 0 : i32
    %c0_i32_0 = arith.constant 0 : i32
    return %arg0, %arg1, %c0_i32 : i32, i32, i32
  }
}

</mosaic_0001>

<bundles_post_ra>
// kernel: tpu_custom_call.1
= control target key start
LH: loop header
LB: loop body
LE: loop exit
PB: predicated region body
PF: predicated region fallthrough
CT: control target
= control target key end

     0   :  { %7 = vsyncpa [#allocation3], 0  ;;  %s300_s0 = inlined_call_operand.hbm [shape: f32[2,16,64], index: 0, kind: input, shape index: {}]   ;;  %s301_s1 = inlined_call_operand.hbm [shape: f32[4,16], index: 1, kind: input, shape index: {}]   ;;  %s302_s2 = inlined_call_operand.hbm [shape: f32[2,4,64], index: 2, kind: output, shape index: {}]  }
   0x1   :  { %8 = vsyncpa [#allocation6], 0 }
   0x2   :  { %9 = vsyncpa [#allocation4], 0  ;;  %s14_s11 = sshll.u32 %s300_s0, 4  ;;  %s263_s12 = smov [#allocation2]   ;;  %s15_s11 = int_to_ptr.hbm [resolvable:$true] %s14_s11 }
   0x3   :  { %s16_s13 = sshll.u32 %s263_s12, 4  ;;  %s28_s16 = sshll.u32 %s301_s1, 4  ;;  %s17_s13 = int_to_ptr.vmem [resolvable:$true] %s16_s13  ;;  %s29_s16 = int_to_ptr.hbm [resolvable:$true] %s28_s16 }
   0x4   :  { %s264_s17 = smov 128   ;;  %s265_s18 = smov 8  }
   0x5   :  { %22 = dma.hbm_to_vmem [thread:$0]  %s15_s11, 512, %s17_s13, [#allocation3], %s264_s17, %s264_s17, %s265_s18  }
   0x6   :  { %s266_s19 = smov [#allocation5]  }
   0x7   :  { %s30_s20 = sshll.u32 %s266_s19, 4  ;;  %s31_s20 = int_to_ptr.vmem [resolvable:$true] %s30_s20 }
   0x8   :  { %33 = dma.hbm_to_vmem [thread:$0]  %s29_s16, 64, %s31_s20, [#allocation6]  }
   0x9   :  { %257 = dma.done.wait [#allocation3], 512  }
   0xa   :  { %258 = vsyncadd [#allocation3], 4294966784 }
   0xb   :  { %259 = dma.done.wait [#allocation6], 64  }
   0xc   :  { %260 = vsyncadd [#allocation6], 4294967232  ;;  %v44_v0 = vld [vmem:[#allocation2 + $0x8] sm:$0xff]  ;;  %v43_v1 = vld [vmem:[#allocation2] sm:$0xff]  ;;  %vm45_vm0 = vcmask 130048   ;;  %vm69_vm1 = vcmask 519168  }
   0xd   :  { %63 = vmatpush.msra.mxu0 %v44_v0  ;;  %v42_v2 = vld [vmem:[#allocation5] sm:$0xf]  ;;  %v101_v3 = vld [vmem:[#allocation2 + $0x18] sm:$0xff]  ;;  %v100_v4 = vld [vmem:[#allocation2 + $0x10] sm:$0xff]  ;;  %s267_s0 = smov [#allocation7]   ;;  %s158_s23 = sshll.u32 %s302_s2, 4  ;;  %s159_s23 = int_to_ptr.hbm [resolvable:$true] %s158_s23 }
   0xe   :  { %116 = vmatpush.msra.mxu1 %v101_v3  ;;  %s156_s1 = sshll.u32 %s267_s0, 4  ;;  %s268_s24 = smov 64   ;;  %s157_s1 = int_to_ptr.vmem [resolvable:$true] %s156_s1 }
   0xf   :  { %64 = vmatpush.msra.mxu0 %v43_v1  ;;  %s269_s25 = smov 4  }
  0x10   :  { %172 = vmatmul.msk.f32.vlgmr.msra.gmra.mxu0 %vm45_vm0, %v42_v2  ;;  %117 = vmatpush.msra.mxu1 %v100_v4 }
  0x11   :  { %173 = vmatmul.msk.f32.vlgmr.msra.gmra.mxu1 %vm45_vm0, %v42_v2 }
  0x8d   :  { %v66_v5 = vpop.f32.mrf.mxu0 }
  0x8e   :  { %v70_v6 = vsel %vm69_vm1, %v66_v5, 0.0  ;;  %v74_v7 = vmul.f32 %v66_v5, %v66_v5  ;;  %v119_v8 = vpop.f32.mrf.mxu1 }
  0x8f   :  { %71 = vadd.xlane.f32.xlu0 %v70_v6  ;;  %v126_v10 = vmul.f32 %v119_v8, %v119_v8  ;;  %v122_v11 = vsel %vm69_vm1, %v119_v8, 0.0 }
  0x90   :  { %v75_v9 = vsel %vm69_vm1, %v74_v7, 0.0 }
  0x91   :  { %76 = vadd.xlane.f32.xlu1 %v75_v9  ;;  %v127_v12 = vsel %vm69_vm1, %v126_v10, 0.0 }
  0x97   :  { %123 = vadd.xlane.f32.xlu0 %v122_v11 }
  0x99   :  { %128 = vadd.xlane.f32.xlu1 %v127_v12 }
 0x102   :  { %v72_v13 = vpop.xlane.xlu0 %71 }
 0x103   :  { %v73_v14 = vmul.f32 0.015625, %v72_v13 }
 0x104   :  { %v77_v15 = vpop.xlane.xlu1 %76 }
 0x105   :  { %v79_v16 = vmul.f32 %v73_v14, %v73_v14  ;;  %v78_v17 = vmul.f32 0.015625, %v77_v15  ;;  %v82_v36 = vsub.f32 %v66_v5, %v73_v14 }
 0x107   :  { %v80_v18 = vsub.f32 %v78_v17, %v79_v16 }
 0x109   :  { %v81_v19 = vmax.f32 %v80_v18, 0.0 }
 0x10a   :  { %v124_v20 = vpop.xlane.xlu0 %123 }
 0x10b   :  { %v83_v21 = vadd.f32 1e-05, %v81_v19  ;;  %v125_v22 = vmul.f32 0.015625, %v124_v20 }
 0x10c   :  { %v129_v23 = vpop.xlane.xlu1 %128 }
 0x10d   :  { %181 = vrsqrt.f32 %v83_v21  ;;  %v131_v24 = vmul.f32 %v125_v22, %v125_v22  ;;  %v130_v25 = vmul.f32 0.015625, %v129_v23  ;;  %vm90_vm3 = vweird.f32 %v83_v21 }
 0x10e   :  { %v134_v46 = vsub.f32 %v119_v8, %v125_v22 }
 0x10f   :  { %v132_v26 = vsub.f32 %v130_v25, %v131_v24 }
 0x111   :  { %v133_v27 = vmax.f32 %v132_v26, 0.0 }
 0x113   :  { %v182_v28 = vpop.eup %181  ;;  %v135_v30 = vadd.f32 1e-05, %v133_v27 }
 0x114   :  { %v85_v29 = vmul.f32 %v182_v28, %v83_v21  ;;  %vm91_vm2 = vweird.f32 %v182_v28 }
 0x115   :  { %183 = vrsqrt.f32 %v135_v30  ;;  %vm92_vm4 = vmor %vm90_vm3, %vm91_vm2  ;;  %vm142_vm7 = vweird.f32 %v135_v30 }
 0x116   :  { %v86_v31 = vmul.f32 %v182_v28, %v85_v29 }
 0x118   :  { %v87_v32 = vmul.f32 0.5, %v86_v31 }
 0x11a   :  { %v88_v33 = vsub.f32 1.5, %v87_v32 }
 0x11b   :  { %v184_v34 = vpop.eup %183 }
 0x11c   :  { %v89_v35 = vmul.f32 %v182_v28, %v88_v33  ;;  %v137_v37 = vmul.f32 %v184_v34, %v135_v30  ;;  %vm143_vm6 = vweird.f32 %v184_v34 }
 0x11d   :  { %vm144_vm8 = vmor %vm142_vm7, %vm143_vm6 }
 0x11e   :  { %v93_v38 = vsel %vm92_vm4, %v182_v28, %v89_v35  ;;  %v138_v40 = vmul.f32 %v184_v34, %v137_v37 }
 0x11f   :  { %v94_v39 = vmul.f32 %v93_v38, %v82_v36 }
 0x120   :  { %v139_v42 = vmul.f32 0.5, %v138_v40 }
 0x121   :  { %v96_v41 = vmul.f32 0.01, %v94_v39  ;;  %vm95_vm5 = vcmp.ge.f32.partialorder %v94_v39, 0.0 }
 0x122   :  { %v140_v43 = vsub.f32 1.5, %v139_v42 }
 0x123   :  { %v97_v44 = vsel %vm95_vm5, %v94_v39, %v96_v41 }
 0x124   :  { %98 = vst.msk [vmem:[#allocation7] sm:$0xf] %vm69_vm1, %v97_v44  ;;  %v141_v45 = vmul.f32 %v184_v34, %v140_v43 }
 0x126   :  { %v145_v47 = vsel %vm144_vm8, %v184_v34, %v141_v45 }
 0x127   :  { %v146_v48 = vmul.f32 %v145_v47, %v134_v46 }
 0x129   :  { %vm147_vm9 = vcmp.ge.f32.partialorder %v146_v48, 0.0  ;;  %v148_v49 = vmul.f32 0.01, %v146_v48 }
 0x12b   :  { %v149_v50 = vsel %vm147_vm9, %v146_v48, %v148_v49 }
 0x12c   :  { %151 = vst.msk [vmem:[#allocation7 + $0x4] sm:$0xf] %vm69_vm1, %v149_v50 }
 0x12d   :  { %164 = dma.vmem_to_hbm [thread:$0]  %s157_s1, 128, %s159_s23, [#allocation4], %s268_s24, %s268_s24, %s269_s25  }
 0x12e   :  { %261 = dma.done.wait [#allocation4], 128  }
 0x12f   :  { %262 = vsyncadd [#allocation4], 4294967168 }
 0x130   :  { %169 = vsyncpa [#allocation3], 1 }
 0x131   :  { %170 = vsyncpa [#allocation6], 1 }
 0x132   :  { %171 = vsyncpa [#allocation4], 1 }

</bundles_post_ra>
